<compile_context>
chip_gen: v7x
topology: tpu7x:2x2x1
jax: 0.10.0
libtpu: 0.0.40
codegen_flags: <defaults>
</compile_context>

<pallas_src>
import functools

import jax
import jax.numpy as jnp
from jax.experimental import pallas as pl
from jax.experimental.pallas import tpu as pltpu


# ----------------------------- Pallas kernel -------------------------------

def fused_conv_gap_fc_kernel(x_ref, wconv_ref, bconv_ref, poolw_ref,
                             wfc_ref, bfc_ref, o_ref, *, K, Wp, Lout):
    """One image of the fused backbone.

    x_ref     : (1, C, Lp)      bf16  flat zero-padded image, Lp=(H+2)*(W+2)
    wconv_ref : (K*K, Cout, C)  bf16  conv taps, tap t = (kh, kw) = (t//K, t%K)
    bconv_ref : (Cout, 1)       f32   conv bias
    poolw_ref : (1, Lout)       f32   1/HW at valid output cols, 0 at pad cols
    wfc_ref   : (ncls, Cout)    f32   classifier weights (transposed)
    bfc_ref   : (ncls, 1)       f32   classifier bias
    o_ref     : (1, ncls, 1)    f32   logits for this image
    """
    x = x_ref[0]                                     # (C, Lp) bf16
    cout = wconv_ref.shape[1]

    # 3x3 conv as 9 shifted matmuls over the flat padded image: every tap is a
    # static lane-offset slice of the SAME VMEM-resident image (input read from
    # HBM exactly once).  bf16 operands on the MXU, f32 accumulation.
    acc = jnp.zeros((cout, Lout), jnp.float32)
    for t in range(K * K):
        kh, kw = t // K, t % K
        shift = kh * Wp + kw
        tap = x[:, shift:shift + Lout]               # (C, Lout) bf16
        acc = acc + jnp.dot(wconv_ref[t], tap,
                            preferred_element_type=jnp.float32)

    conv = jnp.maximum(acc + bconv_ref[...], 0.0)    # bias + ReLU, f32

    # Global average pool: multiply by the resident pool-weight row (masks the
    # width-pad columns and applies 1/HW) and lane-reduce.  Tiny; the XLU has
    # plenty of slack in this HBM-bound kernel, and f32 keeps the scale exact.
    pooled = jnp.sum(conv * poolw_ref[...], axis=1, keepdims=True)  # (Cout, 1)

    # Classifier head (negligible compute, kept f32 for accuracy).
    logits = jnp.dot(wfc_ref[...], pooled,
                     preferred_element_type=jnp.float32) + bfc_ref[...]
    o_ref[...] = logits[None]                        # (1, ncls, 1)


# ------------------------------- JAX glue ----------------------------------

def base_adapter_forward(x_nchw, params):
    """Synthetic `_model` forward, fused into a single Pallas kernel."""
    N, C, H, W = x_nchw.shape
    w_conv, b_conv, w_fc, b_fc = params
    Cout, _, K, _ = w_conv.shape
    ncls = w_fc.shape[1]
    assert K == 3, "shifted-tap conv below assumes 3x3 / padding=1"

    Hp, Wp = H + 2, W + 2
    Lp = Hp * Wp
    Lout = (H - 1) * Wp + W          # flat output extent in padded-width coords
    HW = H * W

    # The only per-image HBM stream: zero-padded image, flattened, bf16.
    xpad = jnp.pad(x_nchw, ((0, 0), (0, 0), (1, 1), (1, 1)))
    x_flat = xpad.reshape(N, C, Lp).astype(jnp.bfloat16)          # (N, C, Lp)

    # Small constant operands (constant index maps -> DMA'd once, VMEM-resident).
    w_taps = jnp.transpose(w_conv, (2, 3, 0, 1)).reshape(K * K, Cout, C)
    w_taps = w_taps.astype(jnp.bfloat16)                          # (K*K, Cout, C)
    b_conv_c = b_conv.reshape(Cout, 1).astype(jnp.float32)        # (Cout, 1)
    w_fc_t = w_fc.T.astype(jnp.float32)                           # (ncls, Cout)
    b_fc_c = b_fc.reshape(ncls, 1).astype(jnp.float32)            # (ncls, 1)

    # Pool-weight row: 1/HW at valid output columns (w < W), 0 at pad columns.
    cols = jnp.arange(Lout) % Wp
    pool_w = jnp.where(cols < W, 1.0 / HW, 0.0).astype(jnp.float32)[None, :]

    kernel = functools.partial(fused_conv_gap_fc_kernel, K=K, Wp=Wp, Lout=Lout)

    cost = pl.CostEstimate(
        flops=N * (2 * Cout * C * K * K * Lout + 3 * Cout * Lout
                   + 2 * ncls * Cout),
        transcendentals=0,
        bytes_accessed=(x_flat.size * 2 + w_taps.size * 2
                        + (b_conv_c.size + pool_w.size + w_fc_t.size
                           + b_fc_c.size) * 4
                        + N * ncls * 4),
    )

    out = pl.pallas_call(
        kernel,
        out_shape=jax.ShapeDtypeStruct((N, ncls, 1), jnp.float32),
        grid=(N,),
        in_specs=[
            pl.BlockSpec((1, C, Lp), lambda b: (b, 0, 0)),        # image stream
            pl.BlockSpec((K * K, Cout, C), lambda b: (0, 0, 0)),  # conv taps
            pl.BlockSpec((Cout, 1), lambda b: (0, 0)),            # conv bias
            pl.BlockSpec((1, Lout), lambda b: (0, 0)),            # pool weights
            pl.BlockSpec((ncls, Cout), lambda b: (0, 0)),         # fc weights^T
            pl.BlockSpec((ncls, 1), lambda b: (0, 0)),            # fc bias
        ],
        out_specs=pl.BlockSpec((1, ncls, 1), lambda b: (b, 0, 0)),
        compiler_params=pltpu.CompilerParams(
            # Every image is independent -> fully parallel axis; on v7x the two
            # TensorCores split the batch, on v5e/v6e this is a no-op.
            dimension_semantics=("parallel",),
        ),
        cost_estimate=cost,
    )(x_flat, w_taps, b_conv_c, pool_w, w_fc_t, b_fc_c)

    return out.reshape(N, ncls)


def reference_forward(x_nchw, params):
    """Pure-JAX f32 reference for correctness checking."""
    w_conv, b_conv, w_fc, b_fc = params
    y = jax.lax.conv_general_dilated(
        x_nchw, w_conv, window_strides=(1, 1), padding="SAME",
        dimension_numbers=("NCHW", "OIHW", "NCHW"))
    y = jnp.maximum(y + b_conv[None, :, None, None], 0.0)
    pooled = jnp.mean(y, axis=(2, 3))                             # (N, Cout)
    return pooled @ w_fc + b_fc[None, :]


# --------------------------------- main -------------------------------------

if __name__ == "__main__":
    key = jax.random.PRNGKey(0)
    k_x, k_wc, k_bc, k_wf, k_bf = jax.random.split(key, 5)

    N, C, H, W = 2, 4, 16, 16
    Cout, K, ncls = 32, 3, 10

    x = jax.random.normal(k_x, (N, C, H, W), dtype=jnp.float32)
    w_conv = jax.random.normal(k_wc, (Cout, C, K, K), dtype=jnp.float32) * 0.1
    b_conv = jax.random.normal(k_bc, (Cout,), dtype=jnp.float32) * 0.1
    w_fc = jax.random.normal(k_wf, (Cout, ncls), dtype=jnp.float32) * 0.1
    b_fc = jax.random.normal(k_bf, (ncls,), dtype=jnp.float32) * 0.1
    params = (w_conv, b_conv, w_fc, b_fc)

    out = jax.jit(base_adapter_forward)(x, params)
    out = jax.block_until_ready(out)

    ref = reference_forward(x, params)
    assert out.shape == (N, ncls)
    # bf16 MXU operands (f32 accumulation) -> tolerance relaxed vs f32 reference.
    assert jnp.allclose(out, ref, atol=2e-2, rtol=2e-2), "mismatch vs reference"

    print("KERNEL_OK")
</pallas_src>

<mosaic_0001>
module attributes {stable_mosaic.version = 11 : i64} {
  func.func @fused_conv_gap_fc_kernel(%arg0: i32, %arg1: memref<1x4x324xbf16, #tpu.memory_space<vmem>>, %arg2: memref<9x32x4xbf16, #tpu.memory_space<vmem>>, %arg3: memref<32x1xf32, #tpu.memory_space<vmem>>, %arg4: memref<1x286xf32, #tpu.memory_space<vmem>>, %arg5: memref<10x32xf32, #tpu.memory_space<vmem>>, %arg6: memref<10x1xf32, #tpu.memory_space<vmem>>, %arg7: memref<1x10x1xf32, #tpu.memory_space<vmem>>) attributes {dimension_semantics = [#tpu.dimension_semantics<parallel>], iteration_bounds = array<i64: 2>, scalar_prefetch = 0 : i64, scratch_operands = 0 : i64, tpu.core_type = #tpu.core_type<tc>, window_params = [{transform_indices = @transform_0, window_bounds = array<i64: 1, 4, 324>}, {pipeline_mode = #tpu.pipeline_mode<synchronous>, transform_indices = @transform_1, window_bounds = array<i64: 9, 32, 4>}, {pipeline_mode = #tpu.pipeline_mode<synchronous>, transform_indices = @transform_2, window_bounds = array<i64: 32, 1>}, {pipeline_mode = #tpu.pipeline_mode<synchronous>, transform_indices = @transform_3, window_bounds = array<i64: 1, 286>}, {pipeline_mode = #tpu.pipeline_mode<synchronous>, transform_indices = @transform_4, window_bounds = array<i64: 10, 32>}, {pipeline_mode = #tpu.pipeline_mode<synchronous>, transform_indices = @transform_5, window_bounds = array<i64: 10, 1>}, {transform_indices = @transform_6, window_bounds = array<i64: 1, 10, 1>}]} {
    %c0 = arith.constant 0 : index
    %c0_0 = arith.constant 0 : index
    %c0_1 = arith.constant 0 : index
    %0 = vector.load %arg1[%c0, %c0_0, %c0_1] : memref<1x4x324xbf16, #tpu.memory_space<vmem>>, vector<1x4x324xbf16>
    %1 = vector.shape_cast %0 : vector<1x4x324xbf16> to vector<4x324xbf16>
    %cst = arith.constant 0.000000e+00 : f32
    %2 = vector.broadcast %cst : f32 to vector<32x286xf32>
    %3 = vector.extract_strided_slice %1 {offsets = [0, 0], sizes = [4, 286], strides = [1, 1]} : vector<4x324xbf16> to vector<4x286xbf16>
    %c0_2 = arith.constant 0 : index
    %c0_3 = arith.constant 0 : index
    %c0_4 = arith.constant 0 : index
    %4 = vector.load %arg2[%c0_2, %c0_3, %c0_4] : memref<9x32x4xbf16, #tpu.memory_space<vmem>>, vector<1x32x4xbf16>
    %5 = vector.shape_cast %4 : vector<1x32x4xbf16> to vector<32x4xbf16>
    %cst_5 = arith.constant dense<0.000000e+00> : vector<32x286xf32>
    %6 = tpu.matmul %5, %3, %cst_5 {dimension_numbers = #tpu.dot_dimension_numbers<[1], [0], [0], [1], [0, 0, 1, 1], [], []>} : vector<32x4xbf16>, vector<4x286xbf16>, vector<32x286xf32> -> vector<32x286xf32>
    %7 = arith.addf %2, %6 : vector<32x286xf32>
    %8 = vector.extract_strided_slice %1 {offsets = [0, 1], sizes = [4, 286], strides = [1, 1]} : vector<4x324xbf16> to vector<4x286xbf16>
    %c1 = arith.constant 1 : index
    %c0_6 = arith.constant 0 : index
    %c0_7 = arith.constant 0 : index
    %9 = vector.load %arg2[%c1, %c0_6, %c0_7] : memref<9x32x4xbf16, #tpu.memory_space<vmem>>, vector<1x32x4xbf16>
    %10 = vector.shape_cast %9 : vector<1x32x4xbf16> to vector<32x4xbf16>
    %cst_8 = arith.constant dense<0.000000e+00> : vector<32x286xf32>
    %11 = tpu.matmul %10, %8, %cst_8 {dimension_numbers = #tpu.dot_dimension_numbers<[1], [0], [0], [1], [0, 0, 1, 1], [], []>} : vector<32x4xbf16>, vector<4x286xbf16>, vector<32x286xf32> -> vector<32x286xf32>
    %12 = arith.addf %7, %11 : vector<32x286xf32>
    %13 = vector.extract_strided_slice %1 {offsets = [0, 2], sizes = [4, 286], strides = [1, 1]} : vector<4x324xbf16> to vector<4x286xbf16>
    %c2 = arith.constant 2 : index
    %c0_9 = arith.constant 0 : index
    %c0_10 = arith.constant 0 : index
    %14 = vector.load %arg2[%c2, %c0_9, %c0_10] : memref<9x32x4xbf16, #tpu.memory_space<vmem>>, vector<1x32x4xbf16>
    %15 = vector.shape_cast %14 : vector<1x32x4xbf16> to vector<32x4xbf16>
    %cst_11 = arith.constant dense<0.000000e+00> : vector<32x286xf32>
    %16 = tpu.matmul %15, %13, %cst_11 {dimension_numbers = #tpu.dot_dimension_numbers<[1], [0], [0], [1], [0, 0, 1, 1], [], []>} : vector<32x4xbf16>, vector<4x286xbf16>, vector<32x286xf32> -> vector<32x286xf32>
    %17 = arith.addf %12, %16 : vector<32x286xf32>
    %18 = vector.extract_strided_slice %1 {offsets = [0, 18], sizes = [4, 286], strides = [1, 1]} : vector<4x324xbf16> to vector<4x286xbf16>
    %c3 = arith.constant 3 : index
    %c0_12 = arith.constant 0 : index
    %c0_13 = arith.constant 0 : index
    %19 = vector.load %arg2[%c3, %c0_12, %c0_13] : memref<9x32x4xbf16, #tpu.memory_space<vmem>>, vector<1x32x4xbf16>
    %20 = vector.shape_cast %19 : vector<1x32x4xbf16> to vector<32x4xbf16>
    %cst_14 = arith.constant dense<0.000000e+00> : vector<32x286xf32>
    %21 = tpu.matmul %20, %18, %cst_14 {dimension_numbers = #tpu.dot_dimension_numbers<[1], [0], [0], [1], [0, 0, 1, 1], [], []>} : vector<32x4xbf16>, vector<4x286xbf16>, vector<32x286xf32> -> vector<32x286xf32>
    %22 = arith.addf %17, %21 : vector<32x286xf32>
    %23 = vector.extract_strided_slice %1 {offsets = [0, 19], sizes = [4, 286], strides = [1, 1]} : vector<4x324xbf16> to vector<4x286xbf16>
    %c4 = arith.constant 4 : index
    %c0_15 = arith.constant 0 : index
    %c0_16 = arith.constant 0 : index
    %24 = vector.load %arg2[%c4, %c0_15, %c0_16] : memref<9x32x4xbf16, #tpu.memory_space<vmem>>, vector<1x32x4xbf16>
    %25 = vector.shape_cast %24 : vector<1x32x4xbf16> to vector<32x4xbf16>
    %cst_17 = arith.constant dense<0.000000e+00> : vector<32x286xf32>
    %26 = tpu.matmul %25, %23, %cst_17 {dimension_numbers = #tpu.dot_dimension_numbers<[1], [0], [0], [1], [0, 0, 1, 1], [], []>} : vector<32x4xbf16>, vector<4x286xbf16>, vector<32x286xf32> -> vector<32x286xf32>
    %27 = arith.addf %22, %26 : vector<32x286xf32>
    %28 = vector.extract_strided_slice %1 {offsets = [0, 20], sizes = [4, 286], strides = [1, 1]} : vector<4x324xbf16> to vector<4x286xbf16>
    %c5 = arith.constant 5 : index
    %c0_18 = arith.constant 0 : index
    %c0_19 = arith.constant 0 : index
    %29 = vector.load %arg2[%c5, %c0_18, %c0_19] : memref<9x32x4xbf16, #tpu.memory_space<vmem>>, vector<1x32x4xbf16>
    %30 = vector.shape_cast %29 : vector<1x32x4xbf16> to vector<32x4xbf16>
    %cst_20 = arith.constant dense<0.000000e+00> : vector<32x286xf32>
    %31 = tpu.matmul %30, %28, %cst_20 {dimension_numbers = #tpu.dot_dimension_numbers<[1], [0], [0], [1], [0, 0, 1, 1], [], []>} : vector<32x4xbf16>, vector<4x286xbf16>, vector<32x286xf32> -> vector<32x286xf32>
    %32 = arith.addf %27, %31 : vector<32x286xf32>
    %33 = vector.extract_strided_slice %1 {offsets = [0, 36], sizes = [4, 286], strides = [1, 1]} : vector<4x324xbf16> to vector<4x286xbf16>
    %c6 = arith.constant 6 : index
    %c0_21 = arith.constant 0 : index
    %c0_22 = arith.constant 0 : index
    %34 = vector.load %arg2[%c6, %c0_21, %c0_22] : memref<9x32x4xbf16, #tpu.memory_space<vmem>>, vector<1x32x4xbf16>
    %35 = vector.shape_cast %34 : vector<1x32x4xbf16> to vector<32x4xbf16>
    %cst_23 = arith.constant dense<0.000000e+00> : vector<32x286xf32>
    %36 = tpu.matmul %35, %33, %cst_23 {dimension_numbers = #tpu.dot_dimension_numbers<[1], [0], [0], [1], [0, 0, 1, 1], [], []>} : vector<32x4xbf16>, vector<4x286xbf16>, vector<32x286xf32> -> vector<32x286xf32>
    %37 = arith.addf %32, %36 : vector<32x286xf32>
    %38 = vector.extract_strided_slice %1 {offsets = [0, 37], sizes = [4, 286], strides = [1, 1]} : vector<4x324xbf16> to vector<4x286xbf16>
    %c7 = arith.constant 7 : index
    %c0_24 = arith.constant 0 : index
    %c0_25 = arith.constant 0 : index
    %39 = vector.load %arg2[%c7, %c0_24, %c0_25] : memref<9x32x4xbf16, #tpu.memory_space<vmem>>, vector<1x32x4xbf16>
    %40 = vector.shape_cast %39 : vector<1x32x4xbf16> to vector<32x4xbf16>
    %cst_26 = arith.constant dense<0.000000e+00> : vector<32x286xf32>
    %41 = tpu.matmul %40, %38, %cst_26 {dimension_numbers = #tpu.dot_dimension_numbers<[1], [0], [0], [1], [0, 0, 1, 1], [], []>} : vector<32x4xbf16>, vector<4x286xbf16>, vector<32x286xf32> -> vector<32x286xf32>
    %42 = arith.addf %37, %41 : vector<32x286xf32>
    %43 = vector.extract_strided_slice %1 {offsets = [0, 38], sizes = [4, 286], strides = [1, 1]} : vector<4x324xbf16> to vector<4x286xbf16>
    %c8 = arith.constant 8 : index
    %c0_27 = arith.constant 0 : index
    %c0_28 = arith.constant 0 : index
    %44 = vector.load %arg2[%c8, %c0_27, %c0_28] : memref<9x32x4xbf16, #tpu.memory_space<vmem>>, vector<1x32x4xbf16>
    %45 = vector.shape_cast %44 : vector<1x32x4xbf16> to vector<32x4xbf16>
    %cst_29 = arith.constant dense<0.000000e+00> : vector<32x286xf32>
    %46 = tpu.matmul %45, %43, %cst_29 {dimension_numbers = #tpu.dot_dimension_numbers<[1], [0], [0], [1], [0, 0, 1, 1], [], []>} : vector<32x4xbf16>, vector<4x286xbf16>, vector<32x286xf32> -> vector<32x286xf32>
    %47 = arith.addf %42, %46 : vector<32x286xf32>
    %c0_30 = arith.constant 0 : index
    %c0_31 = arith.constant 0 : index
    %48 = vector.load %arg3[%c0_30, %c0_31] : memref<32x1xf32, #tpu.memory_space<vmem>>, vector<32x1xf32>
    %49 = vector.broadcast %48 : vector<32x1xf32> to vector<32x286xf32>
    %50 = arith.addf %47, %49 : vector<32x286xf32>
    %cst_32 = arith.constant 0.000000e+00 : f32
    %51 = vector.broadcast %cst_32 : f32 to vector<32x286xf32>
    %52 = arith.maximumf %50, %51 : vector<32x286xf32>
    %c0_33 = arith.constant 0 : index
    %c0_34 = arith.constant 0 : index
    %53 = vector.load %arg4[%c0_33, %c0_34] : memref<1x286xf32, #tpu.memory_space<vmem>>, vector<1x286xf32>
    %54 = vector.broadcast %53 : vector<1x286xf32> to vector<32x286xf32>
    %55 = arith.mulf %52, %54 : vector<32x286xf32>
    %cst_35 = arith.constant dense<0.000000e+00> : vector<32xf32>
    %56 = vector.multi_reduction <add>, %55, %cst_35 [1] : vector<32x286xf32> to vector<32xf32>
    %57 = vector.shape_cast %56 : vector<32xf32> to vector<32x1xf32>
    %c0_36 = arith.constant 0 : index
    %c0_37 = arith.constant 0 : index
    %58 = vector.load %arg5[%c0_36, %c0_37] : memref<10x32xf32, #tpu.memory_space<vmem>>, vector<10x32xf32>
    %cst_38 = arith.constant dense<0.000000e+00> : vector<10x1xf32>
    %59 = tpu.matmul %58, %57, %cst_38 {dimension_numbers = #tpu.dot_dimension_numbers<[1], [0], [0], [1], [0, 0, 1, 1], [], []>} : vector<10x32xf32>, vector<32x1xf32>, vector<10x1xf32> -> vector<10x1xf32>
    %c0_39 = arith.constant 0 : index
    %c0_40 = arith.constant 0 : index
    %60 = vector.load %arg6[%c0_39, %c0_40] : memref<10x1xf32, #tpu.memory_space<vmem>>, vector<10x1xf32>
    %61 = arith.addf %59, %60 : vector<10x1xf32>
    %62 = vector.shape_cast %61 : vector<10x1xf32> to vector<1x10x1xf32>
    %c0_41 = arith.constant 0 : index
    %c0_42 = arith.constant 0 : index
    %c0_43 = arith.constant 0 : index
    %63 = vector.load %arg7[%c0_41, %c0_42, %c0_43] : memref<1x10x1xf32, #tpu.memory_space<vmem>>, vector<1x10x1xf32>
    tpu.vector_store %arg7[%c0_41, %c0_42, %c0_43], %62 {strides = array<i32>} : memref<1x10x1xf32, #tpu.memory_space<vmem>>, vector<1x10x1xf32>,
    return
  }
  func.func @transform_0(%arg0: i32) -> (i32, i32, i32) {
    %c0_i32 = arith.constant 0 : i32
    %c0_i32_0 = arith.constant 0 : i32
    %c0_i32_1 = arith.constant 0 : i32
    return %arg0, %c0_i32, %c0_i32_0 : i32, i32, i32
  }
  func.func @transform_1(%arg0: i32) -> (i32, i32, i32) {
    %c0_i32 = arith.constant 0 : i32
    %c0_i32_0 = arith.constant 0 : i32
    %c0_i32_1 = arith.constant 0 : i32
    %c0_i32_2 = arith.constant 0 : i32
    return %c0_i32, %c0_i32_0, %c0_i32_1 : i32, i32, i32
  }
  func.func @transform_2(%arg0: i32) -> (i32, i32) {
    %c0_i32 = arith.constant 0 : i32
    %c0_i32_0 = arith.constant 0 : i32
    %c0_i32_1 = arith.constant 0 : i32
    return %c0_i32, %c0_i32_0 : i32, i32
  }
  func.func @transform_3(%arg0: i32) -> (i32, i32) {
    %c0_i32 = arith.constant 0 : i32
    %c0_i32_0 = arith.constant 0 : i32
    %c0_i32_1 = arith.constant 0 : i32
    return %c0_i32, %c0_i32_0 : i32, i32
  }
  func.func @transform_4(%arg0: i32) -> (i32, i32) {
    %c0_i32 = arith.constant 0 : i32
    %c0_i32_0 = arith.constant 0 : i32
    %c0_i32_1 = arith.constant 0 : i32
    return %c0_i32, %c0_i32_0 : i32, i32
  }
  func.func @transform_5(%arg0: i32) -> (i32, i32) {
    %c0_i32 = arith.constant 0 : i32
    %c0_i32_0 = arith.constant 0 : i32
    %c0_i32_1 = arith.constant 0 : i32
    return %c0_i32, %c0_i32_0 : i32, i32
  }
  func.func @transform_6(%arg0: i32) -> (i32, i32, i32) {
    %c0_i32 = arith.constant 0 : i32
    %c0_i32_0 = arith.constant 0 : i32
    %c0_i32_1 = arith.constant 0 : i32
    return %arg0, %c0_i32, %c0_i32_0 : i32, i32, i32
  }
}

</mosaic_0001>

<bundles_post_ra>
// kernel: base_adapter_forward.1
= control target key start
LH: loop header
LB: loop body
LE: loop exit
PB: predicated region body
PF: predicated region fallthrough
CT: control target
= control target key end

     0   :  { %s2271_s21 = smov 0   ;;  %s2550_s0 = inlined_call_operand.vmem [shape: bf16[2,4,324], index: 0, kind: input, shape index: {}]   ;;  %s2551_s1 = inlined_call_operand.vmem [shape: bf16[9,32,4], index: 1, kind: input, shape index: {}]   ;;  %s2552_s2 = inlined_call_operand.vmem [shape: f32[32,1], index: 2, kind: input, shape index: {}]   ;;  %s2553_s3 = inlined_call_operand.vmem [shape: f32[1,286], index: 3, kind: input, shape index: {}]   ;;  %s2554_s4 = inlined_call_operand.vmem [shape: f32[10,32], index: 4, kind: input, shape index: {}]   ;;  %s2555_s5 = inlined_call_operand.vmem [shape: f32[10,1], index: 5, kind: input, shape index: {}]   ;;  %s2556_s6 = inlined_call_operand.vmem [shape: f32[2,10,1], index: 6, kind: output, shape index: {}]  }
   0x1 LB: > { %s1859_s22 = sadd.s32 4294967295, %s2224_s21   ;;  %p1863_p0 = scmp.ge.s32.totalorder %s2224_s21, 1  ;;  %s2224_s21 = sphi %s2271_s21, %s16_s21  }
   0x2   : > { %p212_p1 = scmp.lt.s32.totalorder %s2224_s21, 3 }
   0x4   : > { %p213_p2 = pnand %p1863_p0, %p212_p1 }
   0x5   : > { %p242_p3 = scmp.lt.s32.totalorder (!%p213_p2), %s1859_s22, 1  ;;  %v278_v0 = vlaneseq (!%p213_p2)  ;;  %v2226_v1 = vmov (!%p213_p2), 1983009808   ;;  %v2227_v6 = vmov (!%p213_p2), 0   ;;  %s2228_s27 = smov (!%p213_p2), 127   ;;  %vm296_vm0 = vcmask (!%p213_p2), 1039360  }
   0x6   : > { %216 = sbr.rel (%p213_p2) target bundleno = 860 (0x35c), region = 44  ;;  %v276_v2 = vunpack.c.l.s4 (!%p213_p2), %v2226_v1  ;;  %348 = vmatprep.mubr.bf16.mxu1 (!%p213_p2), %v2227_v6  ;;  %616 = vmatprep.mubr.bf16.mxu0 (!%p213_p2), %v2227_v6  ;;  %s2229_s28 = smov (!%p213_p2), 126   ;;  %vm306_vm1 = vcmask (!%p213_p2), 1041408   ;;  %v2200_v19 = vld [vmem:[%s2551_s1 + $0x10] sm:$0xff] (!%p213_p2)   ;;  %vm566_vm2 = vcmask (!%p213_p2), 1031168   ;;  %v1616_v20 = vld [vmem:[%s2552_s2] sm:$0xff] (!%p213_p2) }
   0x7   : > { %v2281_v3 = vshrl.u32 (!%p213_p2), %v278_v0, 7  ;;  %2197 = vset.pattern.permute.xlu0 (!%p213_p2), %v2227_v6  ;;  %2198 = vset.pattern.permute.xlu1 (!%p213_p2), %v2227_v6  ;;  %s2230_s29 = smov (!%p213_p2), 110   ;;  %s2231_s30 = smov (!%p213_p2), 109   ;;  %v1617_v21 = vld [vmem:[%s2552_s2 + $0x8] sm:$0xff] (!%p213_p2)  ;;  %vm299_vm3 = vcmask (!%p213_p2), 31744   ;;  %v1618_v27 = vld [vmem:[%s2552_s2 + $0x10] sm:$0xff] (!%p213_p2) }
   0x8   : > { %v277_v4 = vunpack.c.0.s8 (!%p213_p2), %v276_v2  ;;  %s2232_s7 = smov (!%p213_p2), 108   ;;  %s2233_s8 = smov (!%p213_p2), 92   ;;  %v1619_v29 = vld [vmem:[%s2552_s2 + $0x18] sm:$0xff] (!%p213_p2)  ;;  %v2355_v30 = vld [vmem:[%s2551_s1 + $0x20] sm:$0xff] (!%p213_p2)   ;;  %vm719_vm4 = vcmask (!%p213_p2), 900096   ;;  %v2375_v39 = vld [vmem:[%s2551_s1 + $0x28] sm:$0xff] (!%p213_p2)  }
   0x9   : > { %s2234_s9 = smov (!%p213_p2), 91   ;;  %s2235_s10 = smov (!%p213_p2), 90   ;;  %v2202_v32 = vld [vmem:[%s2551_s1 + $0x18] sm:$0xff] (!%p213_p2)   ;;  %vm872_vm5 = vcmask (!%p213_p2), 891904   ;;  %v2204_v46 = vld [vmem:[%s2551_s1 + $0x30] sm:$0xff] (!%p213_p2)   ;;  %vm1025_vm6 = vcmask (!%p213_p2), 883712  }
   0xa   : > { %v280_v5 = vsub.s32 (!%p213_p2), %v277_v4, %v2281_v3  ;;  %v2205_v49 = vld [vmem:[%s2551_s1] sm:$0xff] (!%p213_p2)   ;;  %v2206_v53 = vld [vmem:[%s2551_s1 + $0x38] sm:$0xff] (!%p213_p2)   ;;  %v2207_v54 = vld [vmem:[%s2551_s1 + $0x8] sm:$0xff] (!%p213_p2)   ;;  %vm1178_vm7 = vcmask (!%p213_p2), 752640   ;;  %vm1331_vm8 = vcmask (!%p213_p2), 744448   ;;  %vm1484_vm9 = vcmask (!%p213_p2), 736256  }
   0xb   : > { %v2208_v57 = vld [vmem:[%s2551_s1 + $0x40] sm:$0xff] (!%p213_p2)   ;;  %v2209_v63 = vld [vmem:[%s2551_s1 + $0x48] sm:$0xff] (!%p213_p2)   ;;  %v2210_v2 = vld [vmem:[%s2551_s1 + $0x50] sm:$0xff] (!%p213_p2)   ;;  %vm1694_vm10 = vcmask (!%p213_p2), 244736   ;;  %vm1718_vm11 = vcmask (!%p213_p2), 261120   ;;  %vm1802_vm12 = vcmask (!%p213_p2), 1024  }
   0xc   : > { %vm1800_vm13 = vcmask (!%p213_p2), 7168  }
   0xd   : > { %s2558_s22 = smov (!%p242_p3, %s1859_s22), 1 }
   0xe   : > { %s2178_s23 = smul.u32 6, %s2558_s22  ;;  %s1966_s17 = sshll.u32 %s2558_s22, 4 }
  0x10   : > { %s246_s26 = scalar_lea.vmem %s2550_s0, %s2178_s23 }
  0x11   : > { %v253_v7 = vld [vmem:[%s246_s26] sm:$0x3f]  ;;  %s251_s26 = scalar_lea.vmem %s2556_s6, %s1966_s17 }
  0x12   : > { %v2292_v8 = vrot.slane %v253_v7, %v280_v5  ;;  %v274_v9 = vcombine.high %v253_v7, %v253_v7 }
  0x14   : > { %290 = vrot.lane.b32.xlu0 %v2292_v8, %s2228_s27  ;;  %v2295_v10 = vrot.slane %v274_v9, %v280_v5  ;;  %v2299_v11 = vcombine.high %v2292_v8, %v2292_v8  ;;  %v435_v43 = vsel %vm306_vm1, %v2292_v8, 0 }
  0x16   : > { %294 = vrot.lane.b32.xlu1 %v2295_v10, %s2228_s27  ;;  %v441_v52 = vsel %vm306_vm1, %v2295_v10, 0 }
  0x18   : > { %292 = vrot.lane.b32.xlu0 %v2299_v11, %s2228_s27 }
  0x1a   : > { %560 = vrot.lane.b32.xlu1 %v2292_v8, %s2229_s28 }
  0x1c   : > { %562 = vrot.lane.b32.xlu0 %v2299_v11, %s2229_s28 }
  0x1e   : > { %564 = vrot.lane.b32.xlu1 %v2295_v10, %s2229_s28 }
  0x20   : > { %713 = vrot.lane.b32.xlu0 %v2292_v8, %s2230_s29 }
  0x22   : > { %715 = vrot.lane.b32.xlu1 %v2299_v11, %s2230_s29 }
  0x24   : > { %717 = vrot.lane.b32.xlu0 %v2295_v10, %s2230_s29 }
  0x26   : > { %866 = vrot.lane.b32.xlu1 %v2292_v8, %s2231_s30 }
  0x28   : > { %868 = vrot.lane.b32.xlu0 %v2299_v11, %s2231_s30 }
  0x2a   : > { %870 = vrot.lane.b32.xlu1 %v2295_v10, %s2231_s30 }
  0x2c   : > { %1019 = vrot.lane.b32.xlu0 %v2292_v8, %s2232_s7 }
  0x2e   : > { %1021 = vrot.lane.b32.xlu1 %v2299_v11, %s2232_s7 }
  0x30   : > { %1023 = vrot.lane.b32.xlu0 %v2295_v10, %s2232_s7 }
  0x32   : > { %1172 = vrot.lane.b32.xlu1 %v2292_v8, %s2233_s8 }
  0x34   : > { %1174 = vrot.lane.b32.xlu0 %v2299_v11, %s2233_s8 }
  0x36   : > { %1176 = vrot.lane.b32.xlu1 %v2295_v10, %s2233_s8 }
  0x38   : > { %1325 = vrot.lane.b32.xlu0 %v2292_v8, %s2234_s9 }
  0x3a   : > { %1327 = vrot.lane.b32.xlu1 %v2299_v11, %s2234_s9 }
  0x3c   : > { %1329 = vrot.lane.b32.xlu0 %v2295_v10, %s2234_s9 }
  0x3e   : > { %1478 = vrot.lane.b32.xlu1 %v2292_v8, %s2235_s10 }
  0x40   : > { %1480 = vrot.lane.b32.xlu0 %v2299_v11, %s2235_s10 }
  0x42   : > { %1482 = vrot.lane.b32.xlu1 %v2295_v10, %s2235_s10 }
  0x44   : > { %1622 = vperm.xlu0 %2197, %v1616_v20  }
  0x46   : > { %1627 = vperm.xlu1 %2198, %v1617_v21  }
  0x48   : > { %1637 = vperm.xlu0 %2197, %v1619_v29  }
  0x4a   : > { %1632 = vperm.xlu1 %2198, %v1618_v27  }
  0x86   : > { %v291_v12 = vpop.permute.xlu0 %290 }
  0x88   : > { %v295_v13 = vpop.permute.xlu1 %294 }
  0x89   : > { %v314_v25 = vsel %vm306_vm1, %v295_v13, 0 }
  0x8a   : > { %v293_v14 = vpop.permute.xlu0 %292 }
  0x8b   : > { %v298_v15 = vsel %vm296_vm0, %v293_v14, %v295_v13  ;;  %v297_v16 = vsel %vm296_vm0, %v291_v12, %v293_v14  ;;  %v2212_v14 = vld [vmem:[%s2551_s1 + $0x60] sm:$0xff]  }
  0x8c   : > { %1873 = vmatprep.subr.msk.bf16.mxu1 %vm306_vm1, %v298_v15  ;;  %v561_v17 = vpop.permute.xlu1 %560  ;;  %v308_v18 = vsel %vm306_vm1, %v297_v16, 0 }
  0x8d   : > { %317 = vmatpush1.bf16.msra.mxu1 %v308_v18 }
  0x8e   : > { %2169 = vmatprep.subr.msk.bf16.mxu1 %vm306_vm1, %v295_v13  ;;  %v563_v22 = vpop.permute.xlu0 %562 }
  0x8f   : > { %v567_v23 = vsel %vm566_vm2, %v561_v17, %v563_v22 }
  0x90   : > { %1874 = vmatmul.mubr.msk.bf16.vlgmr.msra.gmra.mrb[0].mxu1 %vm299_vm3, %v2200_v19  ;;  %v2338_v24 = vpop.permute.xlu1 %564  ;;  %v576_v26 = vsel %vm306_vm1, %v567_v23, 0 }
  0x91   : > { %2001 = vmatpush3.bf16.msra.mxu1 %v314_v25  ;;  %v568_v28 = vsel %vm566_vm2, %v563_v22, %v2338_v24  ;;  %358 = vmatprep.mubr.bf16.mxu1 %v2227_v6  ;;  %v582_v62 = vsel %vm306_vm1, %v2338_v24, 0  ;;  %v2214_v22 = vld [vmem:[%s2551_s1 + $0x70] sm:$0xff]   ;;  %v2215_v25 = vld [vmem:[%s2551_s1 + $0x78] sm:$0xff]  }
  0x92   : > { %1891 = vmatprep.subr.msk.bf16.mxu0 %vm306_vm1, %v568_v28  ;;  %v714_v31 = vpop.permute.xlu0 %713  ;;  %1880 = vmatprep.subr.msk.bf16.mxu1 %vm306_vm1, %v2299_v11  ;;  %v2217_v28 = vld [vmem:[%s2551_s1 + $0x88] sm:$0xff]  }
  0x93   : > { %585 = vmatpush1.bf16.msra.mxu0 %v576_v26  ;;  %v2216_v26 = vld [vmem:[%s2551_s1 + $0x80] sm:$0xff]  }
  0x94   : > { %v716_v33 = vpop.permute.xlu1 %715 }
  0x95   : > { %v720_v34 = vsel %vm719_vm4, %v714_v31, %v716_v33 }
  0x96   : > { %1892 = vmatmul.mubr.msk.bf16.vlgmr.msra.gmra.mrb[0].mxu0 %vm299_vm3, %v2355_v30  ;;  %v2364_v35 = vpop.permute.xlu0 %717  ;;  %v729_v36 = vsel %vm306_vm1, %v720_v34, 0 }
  0x97   : > { %626 = vmatprep.mubr.bf16.mxu0 %v2227_v6  ;;  %v721_v37 = vsel %vm719_vm4, %v716_v33, %v2364_v35  ;;  %v735_v7 = vsel %vm306_vm1, %v2364_v35, 0 }
  0x98   : > { %1875 = vmatmul.mubr.msk.bf16.gmra.mrb[4].mxu1 %vm299_vm3, %v2202_v32  ;;  %1902 = vmatprep.subr.msk.bf16.mxu0 %vm306_vm1, %v721_v37  ;;  %v867_v38 = vpop.permute.xlu1 %866  ;;  %v1668_v37 = vsub.s32 0, %v2281_v3 }
  0x99   : > { %2002 = vmatprep.mubr.msk.bf16.mxu1 %vm299_vm3, %v2200_v19  ;;  %738 = vmatpush1.bf16.msra.mxu0 %v729_v36  ;;  %v2213_v19 = vld [vmem:[%s2551_s1 + $0x68] sm:$0xff]  }
  0x9a   : > { %v869_v40 = vpop.permute.xlu0 %868 }
  0x9b   : > { %v873_v45 = vsel %vm872_vm5, %v867_v38, %v869_v40 }
  0x9c   : > { %v2377_v41 = vpop.permute.xlu1 %870  ;;  %v882_v50 = vsel %vm306_vm1, %v873_v45, 0 }
  0x9d   : > { %v874_v42 = vsel %vm872_vm5, %v869_v40, %v2377_v41  ;;  %v888_v12 = vsel %vm306_vm1, %v2377_v41, 0  ;;  %v1664_v40 = vld [vmem:[%s2553_s3] sm:$0x7] }
  0x9e   : > { %1893 = vmatmul.mubr.msk.bf16.gmra.mrb[4].mxu0 %vm299_vm3, %v2375_v39  ;;  %1913 = vmatprep.subr.msk.bf16.mxu0 %vm306_vm1, %v874_v42  ;;  %v1020_v44 = vpop.permute.xlu0 %1019 }
  0x9f   : > { %769 = vmatprep.mubr.bf16.mxu0 %v2227_v6 }
  0xa0   : > { %2003 = vmatmul.mubr.msk.bf16.vlgmr.msra.gmra.mrb[8].mxu1 %vm299_vm3, %v2202_v32  ;;  %v1022_v48 = vpop.permute.xlu1 %1021 }
  0xa1   : > { %444 = vmatpush1.bf16.msra.mxu1 %v435_v43  ;;  %475 = vmatprep.mubr.bf16.mxu1 %v2227_v6  ;;  %v1026_v56 = vsel %vm1025_vm6, %v1020_v44, %v1022_v48 }
  0xa2   : > { %2170 = vmatprep.subr.msk.bf16.mxu1 %vm306_vm1, %v2295_v10  ;;  %v2393_v47 = vpop.permute.xlu0 %1023  ;;  %v1035_v60 = vsel %vm306_vm1, %v1026_v56, 0  ;;  %v2211_v10 = vld [vmem:[%s2551_s1 + $0x58] sm:$0xff]  }
  0xa3   : > { %v1027_v51 = vsel %vm1025_vm6, %v1022_v48, %v2393_v47  ;;  %v1041_v20 = vsel %vm306_vm1, %v2393_v47, 0 }
  0xa4   : > { %v1173_v55 = vpop.permute.xlu1 %1172 }
  0xa6   : > { %1903 = vmatmul.mubr.msk.bf16.vlgmr.msra.gmra.mrb[0].mxu0 %vm299_vm3, %v2204_v46  ;;  %v1175_v58 = vpop.permute.xlu0 %1174 }
  0xa7   : > { %779 = vmatprep.mubr.bf16.mxu0 %v2227_v6  ;;  %891 = vmatpush1.bf16.msra.mxu0 %v882_v50  ;;  %v1179_v1 = vsel %vm1178_vm7, %v1173_v55, %v1175_v58  ;;  %v1669_v50 = vrot.slane %v1664_v40, %v1668_v37 }
  0xa8   : > { %1881 = vmatmul.mubr.msk.bf16.vlgmr.msra.gmra.mrb[0].mxu1 %vm299_vm3, %v2205_v49  ;;  %1924 = vmatprep.subr.msk.bf16.mxu0 %vm306_vm1, %v1027_v51  ;;  %v2424_v59 = vpop.permute.xlu1 %1176  ;;  %v1188_v8 = vsel %vm306_vm1, %v1179_v1, 0 }
  0xa9   : > { %2007 = vmatpush3.bf16.msra.mxu1 %v441_v52  ;;  %485 = vmatprep.mubr.bf16.mxu1 %v2227_v6  ;;  %v1180_v61 = vsel %vm1178_vm7, %v1175_v58, %v2424_v59 }
  0xaa   : > { %2171 = vmatprep.subr.msk.bf16.mxu1 %vm306_vm1, %v2338_v24  ;;  %v1326_v0 = vpop.permute.xlu0 %1325  ;;  %v1194_v24 = vsel %vm306_vm1, %v2424_v59, 0 }
  0xac   : > { %v1328_v5 = vpop.permute.xlu1 %1327 }
  0xad   : > { %v1332_v13 = vsel %vm1331_vm8, %v1326_v0, %v1328_v5 }
  0xae   : > { %1904 = vmatmul.mubr.msk.bf16.gmra.mrb[4].mxu0 %vm299_vm3, %v2206_v53  ;;  %v1330_v4 = vpop.permute.xlu0 %1329  ;;  %v1341_v17 = vsel %vm306_vm1, %v1332_v13, 0 }
  0xaf   : > { %922 = vmatprep.mubr.bf16.mxu0 %v2227_v6  ;;  %v1333_v9 = vsel %vm1331_vm8, %v1328_v5, %v1330_v4  ;;  %v1347_v27 = vsel %vm306_vm1, %v1330_v4, 0 }
  0xb0   : > { %1882 = vmatmul.mubr.msk.bf16.gmra.mrb[4].mxu1 %vm299_vm3, %v2207_v54  ;;  %v1479_v11 = vpop.permute.xlu1 %1478 }
  0xb1   : > { %2008 = vmatprep.mubr.msk.bf16.mxu1 %vm299_vm3, %v2205_v49 }
  0xb2   : > { %v1481_v15 = vpop.permute.xlu0 %1480 }
  0xb3   : > { %v1485_v21 = vsel %vm1484_vm9, %v1479_v11, %v1481_v15 }
  0xb4   : > { %v1483_v16 = vpop.permute.xlu1 %1482  ;;  %v1494_v23 = vsel %vm306_vm1, %v1485_v21, 0 }
  0xb5   : > { %v1486_v18 = vsel %vm1484_vm9, %v1481_v15, %v1483_v16  ;;  %v1500_v29 = vsel %vm306_vm1, %v1483_v16, 0 }
  0xb6   : > { %1914 = vmatmul.mubr.msk.bf16.vlgmr.msra.gmra.mrb[0].mxu0 %vm299_vm3, %v2208_v57 }
  0xb7   : > { %932 = vmatprep.mubr.bf16.mxu0 %v2227_v6  ;;  %1044 = vmatpush1.bf16.msra.mxu0 %v1035_v60 }
  0xb8   : > { %2009 = vmatmul.mubr.msk.bf16.vlgmr.msra.gmra.mrb[8].mxu1 %vm299_vm3, %v2207_v54  ;;  %1935 = vmatprep.subr.msk.bf16.mxu0 %vm306_vm1, %v1180_v61 }
  0xb9   : > { %2013 = vmatpush3.bf16.msra.mxu1 %v582_v62  ;;  %2014 = vmatprep.mubr.msk.bf16.mxu1 %vm299_vm3, %v2355_v30 }
  0xba   : > { %2172 = vmatprep.subr.msk.bf16.mxu1 %vm306_vm1, %v2364_v35 }
  0xbe   : > { %1915 = vmatmul.mubr.msk.bf16.gmra.mrb[4].mxu0 %vm299_vm3, %v2209_v63 }
  0xbf   : > { %1075 = vmatprep.mubr.bf16.mxu0 %v2227_v6 }
  0xc4   : > { %2015 = vmatmul.mubr.msk.bf16.vlgmr.msra.gmra.mrb[8].mxu1 %vm299_vm3, %v2375_v39  ;;  %v1623_v39 = vpop.permute.xlu0 %1622 }
  0xc5   : > { %2019 = vmatpush3.bf16.msra.mxu1 %v735_v7  ;;  %2020 = vmatprep.mubr.msk.bf16.mxu1 %vm299_vm3, %v2204_v46  ;;  %v1628_v46 = vpop.permute.xlu1 %1627 }
  0xc6   : > { %2173 = vmatprep.subr.msk.bf16.mxu1 %vm306_vm1, %v2377_v41  ;;  %1925 = vmatmul.mubr.msk.bf16.vlgmr.msra.gmra.mrb[0].mxu0 %vm299_vm3, %v2210_v2  ;;  %v1672_v41 = vsub.s32 1, %v2281_v3 }
  0xc7   : > { %1085 = vmatprep.mubr.bf16.mxu0 %v2227_v6  ;;  %1197 = vmatpush1.bf16.msra.mxu0 %v1188_v8 }
  0xc8   : > { %1946 = vmatprep.subr.msk.bf16.mxu0 %vm306_vm1, %v1333_v9  ;;  %v1638_v7 = vpop.permute.xlu0 %1637 }
  0xc9   : > { %v1633_v62 = vpop.permute.xlu1 %1632 }
  0xce   : > { %1926 = vmatmul.mubr.msk.bf16.gmra.mrb[4].mxu0 %vm299_vm3, %v2211_v10 }
  0xcf   : > { %1228 = vmatprep.mubr.bf16.mxu0 %v2227_v6 }
  0xd0   : > { %2021 = vmatmul.mubr.msk.bf16.vlgmr.msra.gmra.mrb[8].mxu1 %vm299_vm3, %v2206_v53  ;;  %v1673_v53 = vrot.slane %v1664_v40, %v1672_v41 }
  0xd1   : > { %2025 = vmatpush3.bf16.msra.mxu1 %v888_v12  ;;  %2026 = vmatprep.mubr.msk.bf16.mxu1 %vm299_vm3, %v2208_v57 }
  0xd2   : > { %2174 = vmatprep.subr.msk.bf16.mxu1 %vm306_vm1, %v2393_v47 }
  0xd6   : > { %1936 = vmatmul.mubr.msk.bf16.vlgmr.msra.gmra.mrb[0].mxu0 %vm299_vm3, %v2212_v14 }
  0xd7   : > { %1238 = vmatprep.mubr.bf16.mxu0 %v2227_v6  ;;  %1350 = vmatpush1.bf16.msra.mxu0 %v1341_v17 }
  0xd8   : > { %1957 = vmatprep.subr.msk.bf16.mxu0 %vm306_vm1, %v1486_v18 }
  0xdc   : > { %2027 = vmatmul.mubr.msk.bf16.vlgmr.msra.gmra.mrb[8].mxu1 %vm299_vm3, %v2209_v63 }
  0xdd   : > { %2031 = vmatpush3.bf16.msra.mxu1 %v1041_v20  ;;  %2032 = vmatprep.mubr.msk.bf16.mxu1 %vm299_vm3, %v2210_v2 }
  0xde   : > { %2175 = vmatprep.subr.msk.bf16.mxu1 %vm306_vm1, %v2424_v59  ;;  %1937 = vmatmul.mubr.msk.bf16.gmra.mrb[4].mxu0 %vm299_vm3, %v2213_v19 }
  0xdf   : > { %1381 = vmatprep.mubr.bf16.mxu0 %v2227_v6 }
  0xe6   : > { %1947 = vmatmul.mubr.msk.bf16.vlgmr.msra.gmra.mrb[0].mxu0 %vm299_vm3, %v2214_v22 }
  0xe7   : > { %1391 = vmatprep.mubr.bf16.mxu0 %v2227_v6  ;;  %1503 = vmatpush1.bf16.msra.mxu0 %v1494_v23 }
  0xe8   : > { %2033 = vmatmul.mubr.msk.bf16.vlgmr.msra.gmra.mrb[8].mxu1 %vm299_vm3, %v2211_v10 }
  0xe9   : > { %2037 = vmatpush3.bf16.msra.mxu1 %v1194_v24  ;;  %2038 = vmatprep.mubr.msk.bf16.mxu1 %vm299_vm3, %v2212_v14 }
  0xea   : > { %2176 = vmatprep.subr.msk.bf16.mxu1 %vm306_vm1, %v1330_v4 }
  0xee   : > { %1948 = vmatmul.mubr.msk.bf16.gmra.mrb[4].mxu0 %vm299_vm3, %v2215_v25 }
  0xef   : > { %1534 = vmatprep.mubr.bf16.mxu0 %v2227_v6 }
  0xf4   : > { %2039 = vmatmul.mubr.msk.bf16.vlgmr.msra.gmra.mrb[8].mxu1 %vm299_vm3, %v2213_v19 }
  0xf5   : > { %2043 = vmatpush3.bf16.msra.mxu1 %v1347_v27  ;;  %2044 = vmatprep.mubr.msk.bf16.mxu1 %vm299_vm3, %v2214_v22  ;;  %v1676_v27 = vsub.s32 2, %v2281_v3 }
  0xf6   : > { %2177 = vmatprep.subr.msk.bf16.mxu1 %vm306_vm1, %v1483_v16  ;;  %1958 = vmatmul.mubr.msk.bf16.vlgmr.msra.gmra.mrb[0].mxu0 %vm299_vm3, %v2216_v26 }
  0xf7   : > { %1544 = vmatprep.mubr.bf16.mxu0 %v2227_v6 }
  0xfe   : > { %1959 = vmatmul.mubr.msk.bf16.gmra.mrb[4].mxu0 %vm299_vm3, %v2217_v28 }
 0x100   : > { %2045 = vmatmul.mubr.msk.bf16.vlgmr.msra.gmra.mrb[8].mxu1 %vm299_vm3, %v2215_v25 }
 0x101   : > { %2049 = vmatpush3.bf16.msra.mxu1 %v1500_v29  ;;  %2050 = vmatprep.mubr.msk.bf16.mxu1 %vm299_vm3, %v2216_v26 }
 0x10c   : > { %2051 = vmatmul.mubr.msk.bf16.vlgmr.msra.gmra.mrb[8].mxu1 %vm299_vm3, %v2217_v28 }
 0x17b   : > { %v477_v30 = vpop.f32.mrb[0].mxu1 }
 0x17c   : > { %v479_v31 = vpop.f32.mrb[1].mxu1 }
 0x17d   : > { %v481_v32 = vpop.f32.mrb[2].mxu1 }
 0x17e   : > { %v483_v33 = vpop.f32.mrb[3].mxu1 }
 0x183   : > { %v487_v6 = vpop.f32.mrb[4].mxu1 }
 0x184   : > { %v489_v34 = vpop.f32.mrb[5].mxu1 }
 0x185   : > { %v491_v35 = vpop.f32.mrb[6].mxu1 }
 0x186   : > { %v493_v36 = vpop.f32.mrb[7].mxu1 }
 0x1c9   : > { %v1536_v38 = vpop.f32.mrb[0].mxu0 }
 0x1ca   : > { %v2073_v42 = vadd.f32 %v1536_v38, %v477_v30  ;;  %v1538_v43 = vpop.f32.mrb[1].mxu0 }
 0x1cb   : > { %v2074_v44 = vadd.f32 %v1538_v43, %v479_v31  ;;  %v1540_v45 = vpop.f32.mrb[2].mxu0  ;;  %v1677_v31 = vrot.slane %v1664_v40, %v1676_v27 }
 0x1cc   : > { %v1640_v47 = vadd.f32 %v2073_v42, %v1623_v39  ;;  %v2075_v48 = vadd.f32 %v1540_v45, %v481_v32  ;;  %v1542_v49 = vpop.f32.mrb[3].mxu0 }
 0x1cd   : > { %v1641_v51 = vadd.f32 %v2074_v44, %v1623_v39  ;;  %v2076_v52 = vadd.f32 %v1542_v49, %v483_v33 }
 0x1ce   : > { %v1652_v54 = vmax.f32 %v1640_v47, 0.0  ;;  %v1643_v55 = vadd.f32 %v2075_v48, %v1628_v46 }
 0x1cf   : > { %v1653_v56 = vmax.f32 %v1641_v51, 0.0  ;;  %v1644_v57 = vadd.f32 %v2076_v52, %v1628_v46 }
 0x1d0   : > { %v1655_v58 = vmax.f32 %v1643_v55, 0.0  ;;  %v1681_v59 = vmul.f32 %v1669_v50, %v1652_v54 }
 0x1d1   : > { %v1656_v60 = vmax.f32 %v1644_v57, 0.0  ;;  %v1546_v61 = vpop.f32.mrb[4].mxu0  ;;  %v1682_v63 = vmul.f32 %v1673_v53, %v1653_v56 }
 0x1d2   : > { %v2077_v0 = vadd.f32 %v1546_v61, %v487_v6  ;;  %v1548_v1 = vpop.f32.mrb[5].mxu0  ;;  %v1684_v2 = vmul.f32 %v1669_v50, %v1655_v58  ;;  %v1716_v61 = vld [vmem:[%s2555_s5] sm:$0xff] }
 0x1d3   : > { %v2078_v4 = vadd.f32 %v1548_v1, %v489_v34  ;;  %v1550_v5 = vpop.f32.mrb[6].mxu0  ;;  %v1693_v8 = vadd.f32 %v1682_v63, %v1681_v59  ;;  %v1685_v9 = vmul.f32 %v1673_v53, %v1656_v60  ;;  %v1715_v59 = vld [vmem:[%s2554_s4 + $0x8] sm:$0x3] }
 0x1d4   : > { %v2079_v10 = vadd.f32 %v1550_v5, %v491_v35  ;;  %v1646_v11 = vadd.f32 %v2077_v0, %v1633_v62  ;;  %v1552_v12 = vpop.f32.mrb[7].mxu0  ;;  %v1717_v60 = vld [vmem:[%s2555_s5 + $0x8] sm:$0x3] }
 0x1d5   : > { %v1647_v13 = vadd.f32 %v2078_v4, %v1633_v62  ;;  %v2080_v14 = vadd.f32 %v1552_v12, %v493_v36  ;;  %v1699_v15 = vadd.f32 %v1685_v9, %v1684_v2 }
 0x1d6   : > { %v1658_v16 = vmax.f32 %v1646_v11, 0.0  ;;  %v1649_v17 = vadd.f32 %v2079_v10, %v1638_v7 }
 0x1d7   : > { %v1659_v18 = vmax.f32 %v1647_v13, 0.0  ;;  %v1650_v19 = vadd.f32 %v2080_v14, %v1638_v7 }
 0x1d8   : > { %v1661_v20 = vmax.f32 %v1649_v17, 0.0  ;;  %v1687_v21 = vmul.f32 %v1669_v50, %v1658_v16 }
 0x1d9   : > { %v1662_v22 = vmax.f32 %v1650_v19, 0.0  ;;  %v1688_v23 = vmul.f32 %v1673_v53, %v1659_v18 }
 0x1da   : > { %v1690_v24 = vmul.f32 %v1669_v50, %v1661_v20 }
 0x1db   : > { %v1691_v25 = vmul.f32 %v1673_v53, %v1662_v22  ;;  %v1704_v26 = vadd.f32 %v1688_v23, %v1687_v21 }
 0x1dd   : > { %v1709_v28 = vadd.f32 %v1691_v25, %v1690_v24 }
 0x1df   : > { %v2052_v29 = vpop.f32.mrb[8].mxu1 }
 0x1e0   : > { %v1648_v30 = vadd.f32 %v2052_v29, %v1633_v62  ;;  %v1589_v32 = vpop.f32.mrb[9].mxu1 }
 0x1e1   : > { %v1642_v33 = vadd.f32 %v1623_v39, %v1589_v32  ;;  %v2053_v6 = vpop.f32.mrb[10].mxu1 }
 0x1e2   : > { %v1660_v34 = vmax.f32 %v1648_v30, 0.0  ;;  %v1651_v35 = vadd.f32 %v2053_v6, %v1638_v7  ;;  %v1592_v36 = vpop.f32.mrb[11].mxu1 }
 0x1e3   : > { %v1654_v37 = vmax.f32 %v1642_v33, 0.0  ;;  %v1645_v38 = vadd.f32 %v1628_v46, %v1592_v36  ;;  %v1714_v46 = vld [vmem:[%s2554_s4] sm:$0xff] }
 0x1e4   : > { %v1689_v41 = vmul.f32 %v1677_v31, %v1660_v34  ;;  %v1663_v42 = vmax.f32 %v1651_v35, 0.0  ;;  %2062 = vmatprep.mubr.msk.f32.mxu1 %vm1718_vm11, %v1714_v46 }
 0x1e5   : > { %v1683_v43 = vmul.f32 %v1677_v31, %v1654_v37  ;;  %v1657_v44 = vmax.f32 %v1645_v38, 0.0 }
 0x1e6   : > { %v1692_v45 = vmul.f32 %v1677_v31, %v1663_v42  ;;  %v1705_v47 = vsel %vm1694_vm10, %v1689_v41, 0.0 }
 0x1e7   : > { %v1686_v3 = vmul.f32 %v1677_v31, %v1657_v44  ;;  %v1695_v48 = vsel %vm1694_vm10, %v1683_v43, 0.0  ;;  %v1706_v49 = vadd.f32 %v1705_v47, %v1704_v26 }
 0x1e8   : > { %v1696_v50 = vadd.f32 %v1695_v48, %v1693_v8  ;;  %v1710_v40 = vsel %vm1694_vm10, %v1692_v45, 0.0 }
 0x1e9   : > { %v1700_v51 = vsel %vm1694_vm10, %v1686_v3, 0.0  ;;  %v1711_v39 = vadd.f32 %v1710_v40, %v1709_v28 }
 0x1ea   : > { %1697 = vadd.xlane.f32.xlu1 %v1696_v50  ;;  %v1701_v52 = vadd.f32 %v1700_v51, %v1699_v15 }
 0x1ec   : > { %1702 = vadd.xlane.f32.xlu0 %v1701_v52 }
 0x1ee   : > { %1712 = vadd.xlane.f32.xlu1 %v1711_v39 }
 0x1f0   : > { %1707 = vadd.xlane.f32.xlu0 %v1706_v49 }
 0x277   : > { %v1698_v53 = vpop.xlane.xlu1 %1697 }
 0x279   : > { %v1703_v54 = vpop.xlane.xlu0 %1702 }
 0x27a   : > { %v2065_v55 = vpack.c.bf16 %v1703_v54, %v1698_v53 }
 0x27b   : > { %v1713_v56 = vpop.xlane.xlu1 %1712 }
 0x27c   : > { %2066 = vmatprep.subr.bf16.mxu1 %v2065_v55 }
 0x27d   : > { %2068 = vmatpush3.bf16.msra.mxu1 %v2065_v55  ;;  %v1708_v57 = vpop.xlane.xlu0 %1707 }
 0x27e   : > { %v2069_v58 = vpack.c.bf16 %v1713_v56, %v1708_v57 }
 0x280   : > { %2070 = vmatprep.subr.bf16.mxu1 %v2069_v58 }
 0x281   : > { %2072 = vmatpush3.bf16.msra.mxu1 %v2069_v58 }
 0x284   : > { %2063 = vmatmul.mubr.msk.f32.vlgmr.msra.gmra.mrb[12].mxu1 %vm1718_vm11, %v1715_v59 }
 0x357   : > { %v2064_v62 = vpop.f32.mrb[12].mxu1 }
 0x358   : > { %v1797_v63 = vadd.f32 %v2064_v62, %v1717_v60  ;;  %v1791_v0 = vpop.f32.mrb[13].mxu1 }
 0x359   : > { %v1792_v1 = vadd.f32 %v1791_v0, %v1716_v61 }
 0x35a   : > { %1803 = vst.msk [vmem:[%s251_s26 + $0x8] sm:$0x3] %vm1802_vm12, %v1797_v63 }
 0x35b   : > { %1801 = vst.msk [vmem:[%s251_s26] sm:$0xff] %vm1800_vm13, %v1792_v1 }
 0x35c PF: > { %s16_s21 = sadd.s32 1, %s2224_s21  }
 0x35d   : > { %p13_p4 = scmp.ge.s32.totalorder %s16_s21, 4  }
 0x35f   :  { %15 = sbr.rel (!%p13_p4) target bundleno = 1 (0x1), region = 82 }

</bundles_post_ra>
